<compile_context>
chip_gen: v7x
topology: tpu7x:2x2x1
jax: 0.10.0
libtpu: 0.0.40
codegen_flags: <defaults>
</compile_context>

<pallas_src>
import functools

import jax
import jax.numpy as jnp
import numpy as np
from jax.experimental import pallas as pl
from jax.experimental.pallas import tpu as pltpu

EPS = 1e-5
MOMENTUM = 0.997
NEG_SLOPE = 0.01  # nn.LeakyReLU() default


# ----------------------------------------------------------------------------
# Fused kernel: conv (im2col matmul) + SwitchNorm2d (training) + LeakyReLU
# ----------------------------------------------------------------------------
def conv2d_block_kernel(gates_ref,            # SMEM (6,): softmax'd mean/var gates
                        xcols_ref,            # VMEM [K, N*S] im2col patches (lane-dense)
                        w_ref,                # VMEM [C, K]   conv weight (flattened)
                        gamma_ref, beta_ref,  # VMEM [C, 1]   affine params
                        run_ref,              # VMEM [C, 2]   running mean | var
                        out_ref,              # VMEM [C, N*S]
                        new_run_ref,          # VMEM [C, 2]
                        *, n_batch, s):
    # --- convolution: one lane-dense MXU matmul for the whole batch ----------
    y = jnp.dot(w_ref[...], xcols_ref[...],
                preferred_element_type=jnp.float32)            # [C, N*S] fp32

    # --- SwitchNorm statistics (one-pass sum / sumsq, per-batch slices) ------
    inv_s = 1.0 / s
    inv_n = 1.0 / n_batch
    # Static, lane-aligned slices (s is a multiple of 128) -> no relayout.
    ys = [y[:, n * s:(n + 1) * s] for n in range(n_batch)]     # each [C, S]
    sums = [jnp.sum(yn, axis=1, keepdims=True) for yn in ys]               # [C, 1]
    sumsqs = [jnp.sum(yn * yn, axis=1, keepdims=True) for yn in ys]        # [C, 1]
    means_in = [sn * inv_s for sn in sums]                                 # [C, 1]
    # torch.Tensor.var(-1) default is unbiased -> divide by (S - 1)
    vars_in = [(sq - sn * mn) * (1.0 / (s - 1))
               for sq, sn, mn in zip(sumsqs, sums, means_in)]              # [C, 1]
    temps = [vn + mn * mn for vn, mn in zip(vars_in, means_in)]            # [C, 1]

    # layer-norm stats: reduce over C (tiny [C,1] -> [1,1] XLU reduce)
    means_ln = [jnp.mean(mn, axis=0, keepdims=True) for mn in means_in]    # [1, 1]
    vars_ln = [jnp.mean(tn, axis=0, keepdims=True) - ml * ml
               for tn, ml in zip(temps, means_ln)]                         # [1, 1]

    # batch-norm stats: plain VPU adds of [C,1] vectors (no axis-0 reduce)
    mean_bn = sum(means_in) * inv_n                                        # [C, 1]
    var_bn = sum(temps) * inv_n - mean_bn * mean_bn                        # [C, 1]

    # --- gating (softmax done in wrapper; scalars read from SMEM) ------------
    mw0, mw1, mw2 = gates_ref[0], gates_ref[1], gates_ref[2]
    vw0, vw1, vw2 = gates_ref[3], gates_ref[4], gates_ref[5]
    gamma = gamma_ref[...]                                                 # [C, 1]
    beta = beta_ref[...]                                                   # [C, 1]

    # --- normalize + affine + LeakyReLU, per batch (static unrolled) ---------
    for n in range(n_batch):
        mean_n = mw0 * means_in[n] + mw1 * means_ln[n] + mw2 * mean_bn     # [C, 1]
        var_n = vw0 * vars_in[n] + vw1 * vars_ln[n] + vw2 * var_bn         # [C, 1]
        scale = gamma * jax.lax.rsqrt(var_n + EPS)                         # EUP rsqrt
        shift = beta - mean_n * scale
        o = ys[n] * scale + shift                                          # 2 big ops
        o = jnp.maximum(o, NEG_SLOPE * o)                                  # LeakyReLU
        out_ref[:, n * s:(n + 1) * s] = o.astype(out_ref.dtype)

    # --- EMA update of running buffers, packed into one (C, 2) output -------
    new_stats = jnp.concatenate([mean_bn, var_bn], axis=1)                 # [C, 2]
    new_run_ref[...] = MOMENTUM * run_ref[...] + (1.0 - MOMENTUM) * new_stats


# ----------------------------------------------------------------------------
# Wrapper (layout plumbing only: padding, im2col, softmax of the 3-vectors)
# ----------------------------------------------------------------------------
def _im2col(x, kh, kw, stride, padding):
    n, cin, h, w = x.shape
    xp = jnp.pad(x, ((0, 0), (0, 0), (padding, padding), (padding, padding)))
    hout = (h + 2 * padding - kh) // stride + 1
    wout = (w + 2 * padding - kw) // stride + 1
    taps = []
    for ky in range(kh):
        for kx in range(kw):
            taps.append(xp[:, :,
                           ky:ky + stride * hout:stride,
                           kx:kx + stride * wout:stride])
    cols = jnp.stack(taps, axis=2)                        # [N, Cin, KH*KW, Ho, Wo]
    cols = cols.reshape(n, cin * kh * kw, hout * wout)    # k = (ci, ky, kx) matches
    return cols, hout, wout                               # weight.reshape(Cout, -1)


def conv2d_block(x, conv_w, gamma, beta, mean_weight, var_weight,
                 running_mean, running_var, *, stride=1, padding=1):
    N, Cin, H, W = x.shape
    Cout, _, KH, KW = conv_w.shape

    cols, Hout, Wout = _im2col(x.astype(jnp.float32), KH, KW, stride, padding)
    S = Hout * Wout
    K = Cin * KH * KW
    # Lane-dense RHS for a single whole-batch matmul: [K, N*S].
    cols_kns = cols.transpose(1, 0, 2).reshape(K, N * S)
    w2d = conv_w.reshape(Cout, K).astype(jnp.float32)

    gates = jnp.concatenate([jax.nn.softmax(mean_weight),
                             jax.nn.softmax(var_weight)]).astype(jnp.float32)
    run_in = jnp.concatenate([running_mean.reshape(Cout, 1),
                              running_var.reshape(Cout, 1)],
                             axis=1).astype(jnp.float32)
    gamma2 = gamma.reshape(Cout, 1).astype(jnp.float32)
    beta2 = beta.reshape(Cout, 1).astype(jnp.float32)

    vmem = pl.BlockSpec(memory_space=pltpu.VMEM)
    smem = pl.BlockSpec(memory_space=pltpu.SMEM)

    kernel = functools.partial(conv2d_block_kernel, n_batch=N, s=S)

    out2d, new_run = pl.pallas_call(
        kernel,
        out_shape=(
            jax.ShapeDtypeStruct((Cout, N * S), jnp.float32),
            jax.ShapeDtypeStruct((Cout, 2), jnp.float32),
        ),
        in_specs=[smem, vmem, vmem, vmem, vmem, vmem],
        out_specs=(vmem, vmem),
    )(gates, cols_kns, w2d, gamma2, beta2, run_in)

    # [C, N*S] -> [N, C, H, W]   (layout plumbing outside the kernel)
    out = out2d.reshape(Cout, N, Hout, Wout).transpose(1, 0, 2, 3)
    new_rm = new_run[:, 0].reshape(1, Cout, 1)
    new_rv = new_run[:, 1].reshape(1, Cout, 1)
    return out, new_rm, new_rv


# ----------------------------------------------------------------------------
# Pure-JAX reference of the PyTorch forward (training=True)
# ----------------------------------------------------------------------------
def conv2d_block_ref(x, conv_w, gamma, beta, mean_weight, var_weight,
                     running_mean, running_var, *, stride=1, padding=1):
    y = jax.lax.conv_general_dilated(
        x.astype(jnp.float32), conv_w.astype(jnp.float32),
        window_strides=(stride, stride),
        padding=((padding, padding), (padding, padding)),
        dimension_numbers=('NCHW', 'OIHW', 'NCHW'),
        precision=jax.lax.Precision.HIGHEST)
    N, C, H, W = y.shape
    xv = y.reshape(N, C, -1)
    mean_in = jnp.mean(xv, axis=-1, keepdims=True)
    var_in = jnp.var(xv, axis=-1, keepdims=True, ddof=1)
    mean_ln = jnp.mean(mean_in, axis=1, keepdims=True)
    temp = var_in + mean_in ** 2
    var_ln = jnp.mean(temp, axis=1, keepdims=True) - mean_ln ** 2
    mean_bn = jnp.mean(mean_in, axis=0, keepdims=True)
    var_bn = jnp.mean(temp, axis=0, keepdims=True) - mean_bn ** 2
    new_rm = MOMENTUM * running_mean + (1.0 - MOMENTUM) * mean_bn
    new_rv = MOMENTUM * running_var + (1.0 - MOMENTUM) * var_bn
    mw = jax.nn.softmax(mean_weight)
    vw = jax.nn.softmax(var_weight)
    mean = mw[0] * mean_in + mw[1] * mean_ln + mw[2] * mean_bn
    var = vw[0] * var_in + vw[1] * var_ln + vw[2] * var_bn
    xh = (xv - mean) / jnp.sqrt(var + EPS)
    xh = xh.reshape(N, C, H, W)
    out = xh * gamma + beta
    out = jnp.where(out >= 0.0, out, NEG_SLOPE * out)   # LeakyReLU
    return out, new_rm, new_rv


if __name__ == "__main__":
    # Conv2dBlock(n_in=4, n_out=8, kernel_size=3, stride=1, padding=1,
    #             norm_fn='switchnorm', acti_fn='lrelu'), training mode.
    N, CIN, H, W = 2, 4, 16, 16
    COUT, KH, KW = 8, 3, 3
    stride, padding = 1, 1

    key = jax.random.PRNGKey(0)
    kx, kw_, kg, kb, km, kv = jax.random.split(key, 6)

    x = jax.random.normal(kx, (N, CIN, H, W), dtype=jnp.float32)
    conv_w = jax.random.normal(kw_, (COUT, CIN, KH, KW), dtype=jnp.float32) \
        / np.sqrt(CIN * KH * KW)
    gamma = 1.0 + 0.1 * jax.random.normal(kg, (1, COUT, 1, 1), dtype=jnp.float32)
    beta = 0.1 * jax.random.normal(kb, (1, COUT, 1, 1), dtype=jnp.float32)
    mean_weight = 1.0 + 0.5 * jax.random.normal(km, (3,), dtype=jnp.float32)
    var_weight = 1.0 + 0.5 * jax.random.normal(kv, (3,), dtype=jnp.float32)
    running_mean = jnp.zeros((1, COUT, 1), dtype=jnp.float32)
    running_var = jnp.zeros((1, COUT, 1), dtype=jnp.float32)

    out, new_rm, new_rv = conv2d_block(
        x, conv_w, gamma, beta, mean_weight, var_weight,
        running_mean, running_var, stride=stride, padding=padding)
    jax.block_until_ready((out, new_rm, new_rv))

    ref_out, ref_rm, ref_rv = conv2d_block_ref(
        x, conv_w, gamma, beta, mean_weight, var_weight,
        running_mean, running_var, stride=stride, padding=padding)

    np.testing.assert_allclose(np.asarray(out), np.asarray(ref_out),
                               rtol=1e-4, atol=1e-4)
    np.testing.assert_allclose(np.asarray(new_rm), np.asarray(ref_rm),
                               rtol=1e-4, atol=1e-6)
    np.testing.assert_allclose(np.asarray(new_rv), np.asarray(ref_rv),
                               rtol=1e-4, atol=1e-6)

    print("KERNEL_OK")
</pallas_src>

<mosaic_0001>
module attributes {stable_mosaic.version = 11 : i64} {
  func.func @conv2d_block_kernel(%arg0: memref<6xf32, #tpu.memory_space<smem>>, %arg1: memref<36x512xf32, #tpu.memory_space<vmem>>, %arg2: memref<8x36xf32, #tpu.memory_space<vmem>>, %arg3: memref<8x1xf32, #tpu.memory_space<vmem>>, %arg4: memref<8x1xf32, #tpu.memory_space<vmem>>, %arg5: memref<8x2xf32, #tpu.memory_space<vmem>>, %arg6: memref<8x512xf32, #tpu.memory_space<vmem>>, %arg7: memref<8x2xf32, #tpu.memory_space<vmem>>) attributes {dimension_semantics = [], scalar_prefetch = 0 : i64, scratch_operands = 0 : i64, tpu.core_type = #tpu.core_type<tc>} {
    %c0 = arith.constant 0 : index
    %c0_0 = arith.constant 0 : index
    %0 = vector.load %arg2[%c0, %c0_0] : memref<8x36xf32, #tpu.memory_space<vmem>>, vector<8x36xf32>
    %c0_1 = arith.constant 0 : index
    %c0_2 = arith.constant 0 : index
    %1 = vector.load %arg1[%c0_1, %c0_2] : memref<36x512xf32, #tpu.memory_space<vmem>>, vector<36x512xf32>
    %cst = arith.constant dense<0.000000e+00> : vector<8x512xf32>
    %2 = tpu.matmul %0, %1, %cst {dimension_numbers = #tpu.dot_dimension_numbers<[1], [0], [0], [1], [0, 0, 1, 1], [], []>} : vector<8x36xf32>, vector<36x512xf32>, vector<8x512xf32> -> vector<8x512xf32>
    %3 = vector.extract_strided_slice %2 {offsets = [0, 0], sizes = [8, 256], strides = [1, 1]} : vector<8x512xf32> to vector<8x256xf32>
    %4 = vector.extract_strided_slice %2 {offsets = [0, 256], sizes = [8, 256], strides = [1, 1]} : vector<8x512xf32> to vector<8x256xf32>
    %cst_3 = arith.constant dense<0.000000e+00> : vector<8xf32>
    %5 = vector.multi_reduction <add>, %3, %cst_3 [1] : vector<8x256xf32> to vector<8xf32>
    %6 = vector.shape_cast %5 : vector<8xf32> to vector<8x1xf32>
    %cst_4 = arith.constant dense<0.000000e+00> : vector<8xf32>
    %7 = vector.multi_reduction <add>, %4, %cst_4 [1] : vector<8x256xf32> to vector<8xf32>
    %8 = vector.shape_cast %7 : vector<8xf32> to vector<8x1xf32>
    %9 = arith.mulf %3, %3 : vector<8x256xf32>
    %cst_5 = arith.constant dense<0.000000e+00> : vector<8xf32>
    %10 = vector.multi_reduction <add>, %9, %cst_5 [1] : vector<8x256xf32> to vector<8xf32>
    %11 = vector.shape_cast %10 : vector<8xf32> to vector<8x1xf32>
    %12 = arith.mulf %4, %4 : vector<8x256xf32>
    %cst_6 = arith.constant dense<0.000000e+00> : vector<8xf32>
    %13 = vector.multi_reduction <add>, %12, %cst_6 [1] : vector<8x256xf32> to vector<8xf32>
    %14 = vector.shape_cast %13 : vector<8xf32> to vector<8x1xf32>
    %cst_7 = arith.constant 3.906250e-03 : f32
    %15 = vector.broadcast %cst_7 : f32 to vector<8x1xf32>
    %16 = arith.mulf %6, %15 : vector<8x1xf32>
    %cst_8 = arith.constant 3.906250e-03 : f32
    %17 = vector.broadcast %cst_8 : f32 to vector<8x1xf32>
    %18 = arith.mulf %8, %17 : vector<8x1xf32>
    %19 = arith.mulf %6, %16 : vector<8x1xf32>
    %20 = arith.subf %11, %19 : vector<8x1xf32>
    %cst_9 = arith.constant 0.00392156886 : f32
    %21 = vector.broadcast %cst_9 : f32 to vector<8x1xf32>
    %22 = arith.mulf %20, %21 : vector<8x1xf32>
    %23 = arith.mulf %8, %18 : vector<8x1xf32>
    %24 = arith.subf %14, %23 : vector<8x1xf32>
    %cst_10 = arith.constant 0.00392156886 : f32
    %25 = vector.broadcast %cst_10 : f32 to vector<8x1xf32>
    %26 = arith.mulf %24, %25 : vector<8x1xf32>
    %27 = arith.mulf %16, %16 : vector<8x1xf32>
    %28 = arith.addf %22, %27 : vector<8x1xf32>
    %29 = arith.mulf %18, %18 : vector<8x1xf32>
    %30 = arith.addf %26, %29 : vector<8x1xf32>
    %cst_11 = arith.constant dense<0.000000e+00> : vector<1xf32>
    %31 = vector.multi_reduction <add>, %16, %cst_11 [0] : vector<8x1xf32> to vector<1xf32>
    %32 = vector.shape_cast %31 : vector<1xf32> to vector<1x1xf32>
    %cst_12 = arith.constant 8.000000e+00 : f32
    %33 = vector.broadcast %cst_12 : f32 to vector<1x1xf32>
    %34 = arith.divf %32, %33 : vector<1x1xf32>
    %cst_13 = arith.constant dense<0.000000e+00> : vector<1xf32>
    %35 = vector.multi_reduction <add>, %18, %cst_13 [0] : vector<8x1xf32> to vector<1xf32>
    %36 = vector.shape_cast %35 : vector<1xf32> to vector<1x1xf32>
    %cst_14 = arith.constant 8.000000e+00 : f32
    %37 = vector.broadcast %cst_14 : f32 to vector<1x1xf32>
    %38 = arith.divf %36, %37 : vector<1x1xf32>
    %cst_15 = arith.constant dense<0.000000e+00> : vector<1xf32>
    %39 = vector.multi_reduction <add>, %28, %cst_15 [0] : vector<8x1xf32> to vector<1xf32>
    %40 = vector.shape_cast %39 : vector<1xf32> to vector<1x1xf32>
    %cst_16 = arith.constant 8.000000e+00 : f32
    %41 = vector.broadcast %cst_16 : f32 to vector<1x1xf32>
    %42 = arith.divf %40, %41 : vector<1x1xf32>
    %43 = arith.mulf %34, %34 : vector<1x1xf32>
    %44 = arith.subf %42, %43 : vector<1x1xf32>
    %cst_17 = arith.constant dense<0.000000e+00> : vector<1xf32>
    %45 = vector.multi_reduction <add>, %30, %cst_17 [0] : vector<8x1xf32> to vector<1xf32>
    %46 = vector.shape_cast %45 : vector<1xf32> to vector<1x1xf32>
    %cst_18 = arith.constant 8.000000e+00 : f32
    %47 = vector.broadcast %cst_18 : f32 to vector<1x1xf32>
    %48 = arith.divf %46, %47 : vector<1x1xf32>
    %49 = arith.mulf %38, %38 : vector<1x1xf32>
    %50 = arith.subf %48, %49 : vector<1x1xf32>
    %cst_19 = arith.constant 0.000000e+00 : f32
    %51 = vector.broadcast %cst_19 : f32 to vector<8x1xf32>
    %52 = arith.addf %51, %16 : vector<8x1xf32>
    %53 = arith.addf %52, %18 : vector<8x1xf32>
    %cst_20 = arith.constant 5.000000e-01 : f32
    %54 = vector.broadcast %cst_20 : f32 to vector<8x1xf32>
    %55 = arith.mulf %53, %54 : vector<8x1xf32>
    %cst_21 = arith.constant 0.000000e+00 : f32
    %56 = vector.broadcast %cst_21 : f32 to vector<8x1xf32>
    %57 = arith.addf %56, %28 : vector<8x1xf32>
    %58 = arith.addf %57, %30 : vector<8x1xf32>
    %cst_22 = arith.constant 5.000000e-01 : f32
    %59 = vector.broadcast %cst_22 : f32 to vector<8x1xf32>
    %60 = arith.mulf %58, %59 : vector<8x1xf32>
    %61 = arith.mulf %55, %55 : vector<8x1xf32>
    %62 = arith.subf %60, %61 : vector<8x1xf32>
    %c0_23 = arith.constant 0 : index
    %63 = memref.load %arg0[%c0_23] : memref<6xf32, #tpu.memory_space<smem>>
    %c1 = arith.constant 1 : index
    %64 = memref.load %arg0[%c1] : memref<6xf32, #tpu.memory_space<smem>>
    %c2 = arith.constant 2 : index
    %65 = memref.load %arg0[%c2] : memref<6xf32, #tpu.memory_space<smem>>
    %c3 = arith.constant 3 : index
    %66 = memref.load %arg0[%c3] : memref<6xf32, #tpu.memory_space<smem>>
    %c4 = arith.constant 4 : index
    %67 = memref.load %arg0[%c4] : memref<6xf32, #tpu.memory_space<smem>>
    %c5 = arith.constant 5 : index
    %68 = memref.load %arg0[%c5] : memref<6xf32, #tpu.memory_space<smem>>
    %c0_24 = arith.constant 0 : index
    %c0_25 = arith.constant 0 : index
    %69 = vector.load %arg3[%c0_24, %c0_25] : memref<8x1xf32, #tpu.memory_space<vmem>>, vector<8x1xf32>
    %c0_26 = arith.constant 0 : index
    %c0_27 = arith.constant 0 : index
    %70 = vector.load %arg4[%c0_26, %c0_27] : memref<8x1xf32, #tpu.memory_space<vmem>>, vector<8x1xf32>
    %71 = vector.broadcast %63 : f32 to vector<8x1xf32>
    %72 = arith.mulf %71, %16 : vector<8x1xf32>
    %73 = vector.broadcast %64 : f32 to vector<1x1xf32>
    %74 = arith.mulf %73, %34 : vector<1x1xf32>
    %75 = vector.broadcast %74 : vector<1x1xf32> to vector<8x1xf32>
    %76 = arith.addf %72, %75 : vector<8x1xf32>
    %77 = vector.broadcast %65 : f32 to vector<8x1xf32>
    %78 = arith.mulf %77, %55 : vector<8x1xf32>
    %79 = arith.addf %76, %78 : vector<8x1xf32>
    %80 = vector.broadcast %66 : f32 to vector<8x1xf32>
    %81 = arith.mulf %80, %22 : vector<8x1xf32>
    %82 = vector.broadcast %67 : f32 to vector<1x1xf32>
    %83 = arith.mulf %82, %44 : vector<1x1xf32>
    %84 = vector.broadcast %83 : vector<1x1xf32> to vector<8x1xf32>
    %85 = arith.addf %81, %84 : vector<8x1xf32>
    %86 = vector.broadcast %68 : f32 to vector<8x1xf32>
    %87 = arith.mulf %86, %62 : vector<8x1xf32>
    %88 = arith.addf %85, %87 : vector<8x1xf32>
    %cst_28 = arith.constant 9.99999974E-6 : f32
    %89 = vector.broadcast %cst_28 : f32 to vector<8x1xf32>
    %90 = arith.addf %88, %89 : vector<8x1xf32>
    %91 = math.rsqrt %90 : vector<8x1xf32>
    %92 = arith.mulf %69, %91 : vector<8x1xf32>
    %93 = arith.mulf %79, %92 : vector<8x1xf32>
    %94 = arith.subf %70, %93 : vector<8x1xf32>
    %95 = vector.broadcast %92 : vector<8x1xf32> to vector<8x256xf32>
    %96 = arith.mulf %3, %95 : vector<8x256xf32>
    %97 = vector.broadcast %94 : vector<8x1xf32> to vector<8x256xf32>
    %98 = arith.addf %96, %97 : vector<8x256xf32>
    %cst_29 = arith.constant 0.00999999977 : f32
    %99 = vector.broadcast %cst_29 : f32 to vector<8x256xf32>
    %100 = arith.mulf %99, %98 : vector<8x256xf32>
    %101 = arith.maximumf %98, %100 : vector<8x256xf32>
    %c0_30 = arith.constant 0 : index
    %c0_31 = arith.constant 0 : index
    %102 = vector.load %arg6[%c0_30, %c0_31] : memref<8x512xf32, #tpu.memory_space<vmem>>, vector<8x256xf32>
    tpu.vector_store %arg6[%c0_30, %c0_31], %101 {strides = array<i32>} : memref<8x512xf32, #tpu.memory_space<vmem>>, vector<8x256xf32>,
    %103 = vector.broadcast %63 : f32 to vector<8x1xf32>
    %104 = arith.mulf %103, %18 : vector<8x1xf32>
    %105 = vector.broadcast %64 : f32 to vector<1x1xf32>
    %106 = arith.mulf %105, %38 : vector<1x1xf32>
    %107 = vector.broadcast %106 : vector<1x1xf32> to vector<8x1xf32>
    %108 = arith.addf %104, %107 : vector<8x1xf32>
    %109 = vector.broadcast %65 : f32 to vector<8x1xf32>
    %110 = arith.mulf %109, %55 : vector<8x1xf32>
    %111 = arith.addf %108, %110 : vector<8x1xf32>
    %112 = vector.broadcast %66 : f32 to vector<8x1xf32>
    %113 = arith.mulf %112, %26 : vector<8x1xf32>
    %114 = vector.broadcast %67 : f32 to vector<1x1xf32>
    %115 = arith.mulf %114, %50 : vector<1x1xf32>
    %116 = vector.broadcast %115 : vector<1x1xf32> to vector<8x1xf32>
    %117 = arith.addf %113, %116 : vector<8x1xf32>
    %118 = vector.broadcast %68 : f32 to vector<8x1xf32>
    %119 = arith.mulf %118, %62 : vector<8x1xf32>
    %120 = arith.addf %117, %119 : vector<8x1xf32>
    %cst_32 = arith.constant 9.99999974E-6 : f32
    %121 = vector.broadcast %cst_32 : f32 to vector<8x1xf32>
    %122 = arith.addf %120, %121 : vector<8x1xf32>
    %123 = math.rsqrt %122 : vector<8x1xf32>
    %124 = arith.mulf %69, %123 : vector<8x1xf32>
    %125 = arith.mulf %111, %124 : vector<8x1xf32>
    %126 = arith.subf %70, %125 : vector<8x1xf32>
    %127 = vector.broadcast %124 : vector<8x1xf32> to vector<8x256xf32>
    %128 = arith.mulf %4, %127 : vector<8x256xf32>
    %129 = vector.broadcast %126 : vector<8x1xf32> to vector<8x256xf32>
    %130 = arith.addf %128, %129 : vector<8x256xf32>
    %cst_33 = arith.constant 0.00999999977 : f32
    %131 = vector.broadcast %cst_33 : f32 to vector<8x256xf32>
    %132 = arith.mulf %131, %130 : vector<8x256xf32>
    %133 = arith.maximumf %130, %132 : vector<8x256xf32>
    %c0_34 = arith.constant 0 : index
    %c256 = arith.constant 256 : index
    %134 = vector.load %arg6[%c0_34, %c256] : memref<8x512xf32, #tpu.memory_space<vmem>>, vector<8x256xf32>
    tpu.vector_store %arg6[%c0_34, %c256], %133 {strides = array<i32>} : memref<8x512xf32, #tpu.memory_space<vmem>>, vector<8x256xf32>,
    %135 = tpu.concatenate %55, %62 in 1 : vector<8x1xf32>, vector<8x1xf32> -> vector<8x2xf32>
    %c0_35 = arith.constant 0 : index
    %c0_36 = arith.constant 0 : index
    %136 = vector.load %arg5[%c0_35, %c0_36] : memref<8x2xf32, #tpu.memory_space<vmem>>, vector<8x2xf32>
    %cst_37 = arith.constant 0.996999979 : f32
    %137 = vector.broadcast %cst_37 : f32 to vector<8x2xf32>
    %138 = arith.mulf %137, %136 : vector<8x2xf32>
    %cst_38 = arith.constant 3.000000e-03 : f32
    %139 = vector.broadcast %cst_38 : f32 to vector<8x2xf32>
    %140 = arith.mulf %139, %135 : vector<8x2xf32>
    %141 = arith.addf %138, %140 : vector<8x2xf32>
    %c0_39 = arith.constant 0 : index
    %c0_40 = arith.constant 0 : index
    %142 = vector.load %arg7[%c0_39, %c0_40] : memref<8x2xf32, #tpu.memory_space<vmem>>, vector<8x2xf32>
    tpu.vector_store %arg7[%c0_39, %c0_40], %141 {strides = array<i32>} : memref<8x2xf32, #tpu.memory_space<vmem>>, vector<8x2xf32>,
    return
  }
}

</mosaic_0001>

<bundles_post_ra>
// kernel: tpu_custom_call.1
= control target key start
LH: loop header
LB: loop body
LE: loop exit
PB: predicated region body
PF: predicated region fallthrough
CT: control target
= control target key end

     0   :  { %13 = vsyncpa [#allocation5], 0  ;;  %s657_s0 = inlined_call_operand.vmem [shape: f32[6], index: 0, kind: input, shape index: {}]   ;;  %s658_s1 = inlined_call_operand.hbm [shape: f32[36,512], index: 1, kind: input, shape index: {}]   ;;  %s659_s2 = inlined_call_operand.vmem [shape: f32[8,36], index: 2, kind: input, shape index: {}]   ;;  %s660_s3 = inlined_call_operand.vmem [shape: f32[8,1], index: 3, kind: input, shape index: {}]   ;;  %s661_s4 = inlined_call_operand.vmem [shape: f32[8,1], index: 4, kind: input, shape index: {}]   ;;  %s662_s5 = inlined_call_operand.vmem [shape: f32[8,2], index: 5, kind: input, shape index: {}]   ;;  %s663_s6 = inlined_call_operand.hbm [shape: f32[8,512], index: 6, kind: output, shape index: {0}]   ;;  %s664_s7 = inlined_call_operand.vmem [shape: f32[8,2], index: 7, kind: output, shape index: {1}]  }
   0x1   :  { %14 = vsyncpa [#allocation3], 0 }
   0x2   :  { %15 = vsyncpa [#allocation4], 0  ;;  %s22_s26 = sshll.u32 %s657_s0, 4  ;;  %s23_s26 = int_to_ptr.vmem [resolvable:$true] %s22_s26 }
   0x3   :  { %s452_s27 = scalar_lea.vmem %s23_s26, 16  ;;  %p457_p1 = scmp.lt.s32.totalorder %s23_s26, %s23_s26 }
   0x4   :  { %p453_p0 = scmp.ne.s32.totalorder %s23_s26, %s452_s27  ;;  %p458_p2 = scmp.lt.s32.totalorder %s452_s27, %s452_s27 }
   0x6   :  { %p459_p3 = por %p458_p2, %p457_p1 }
   0x8   :  { %p460_p4 = pnand %p459_p3, %p453_p0 }
   0xa   :  { %463 = shalt.err (!%p460_p4)
}
   0xb   :  { %s514_s28 = smov [#allocation2]   ;;  %s515_s29 = smov [#allocation6]  }
   0xc   :  { %25 = dma.vmem_to_smem %s23_s26, 16, %s514_s28, [#allocation5]  }
   0xd   :  { %s31_s30 = sshll.u32 %s515_s29, 4  ;;  %s464_s10 = scalar_lea.hbm %s658_s1, 2560  ;;  %s32_s30 = int_to_ptr.vmem [resolvable:$true] %s31_s30 }
   0xe   :  { %p465_p5 = scmp.ne.s32.totalorder %s658_s1, %s464_s10  ;;  %p468_p6 = scmp.lt.u32.totalorder %s464_s10, %s658_s1 }
  0x10   :  { %p470_p7 = pnand %p468_p6, %p465_p5 }
  0x12   :  { %473 = shalt.err (!%p470_p7)
}
  0x13   :  { %s474_s14 = scalar_lea.vmem %s32_s30, 2560  ;;  %p479_p9 = scmp.lt.s32.totalorder %s32_s30, %s32_s30 }
  0x14   :  { %p475_p8 = scmp.ne.s32.totalorder %s32_s30, %s474_s14  ;;  %p480_p10 = scmp.lt.s32.totalorder %s474_s14, %s474_s14 }
  0x16   :  { %p481_p11 = por %p480_p10, %p479_p9 }
  0x18   :  { %p482_p12 = pnand %p481_p11, %p475_p8 }
  0x1a   :  { %485 = shalt.err (!%p482_p12)
}
  0x1b   :  { %s516_s15 = smov 512   ;;  %s517_s16 = smov 32  }
  0x1c   :  { %37 = dma.hbm_to_vmem [thread:$0]  %s658_s1, 2560, %s32_s30, [#allocation3], %s516_s15, %s516_s15, %s517_s16  }
  0x1d   :  { %508 = dma.done.wait [#allocation5], 16  }
  0x1e   :  { %509 = vsyncadd [#allocation5], 4294967280 }
  0x1f   :  { %510 = dma.done.wait [#allocation3], 2560  }
  0x20   :  { %511 = vsyncadd [#allocation3], 4294964736 }
  0x21   :  { %52 = sfence }
  0x22   :  { %v55_v0 = vld [vmem:[#allocation6 + $0x8] sm:$0xff]  ;;  %v54_v2 = vld [vmem:[#allocation6] sm:$0xff]  ;;  %v57_v5 = vld [vmem:[#allocation6 + $0x18] sm:$0xff]  ;;  %v518_v7 = vmov 0.0   ;;  %vm78_vm0 = vcmask 1043456   ;;  %vm74_vm1 = vcmask 293888  }
  0x23   :  { %v59_v1 = vld [vmem:[#allocation6 + $0x28] sm:$0xff]  ;;  %v58_v4 = vld [vmem:[#allocation6 + $0x20] sm:$0xff]  ;;  %v61_v6 = vld [vmem:[#allocation6 + $0x38] sm:$0xff]  ;;  %155 = vmatprep.mubr.f32.mxu0 %v518_v7  ;;  %226 = vmatprep.mubr.f32.mxu1 %v518_v7  ;;  %v519_v42 = vmov 0   ;;  %s619_s20 = sld [smem:[#allocation2 + $0x4]]  ;;  %s422_s23 = sld [smem:[#allocation2 + $0x5]] }
  0x24   :  { %v423_v3 = vpack.c.bf16 %v59_v1, %v55_v0  ;;  %v425_v8 = vpack.c.bf16 %v58_v4, %v54_v2  ;;  %v431_v9 = vpack.c.bf16 %v61_v6, %v57_v5  ;;  %v63_v10 = vld [vmem:[#allocation6 + $0x48] sm:$0xff]  ;;  %v56_v12 = vld [vmem:[#allocation6 + $0x10] sm:$0xff]  ;;  %v62_v15 = vld [vmem:[#allocation6 + $0x40] sm:$0xff]  ;;  %446 = vset.pattern.permute.xlu0 %v519_v42  ;;  %447 = vset.pattern.permute.xlu1 %v519_v42  ;;  %vm384_vm2 = vcmask 7168   ;;  %s418_s25 = sld [smem:[#allocation2 + $0x1]]  ;;  %s302_s26 = sld [smem:[#allocation2]] }
  0x25   :  { %v67_v11 = vld [vmem:[#allocation6 + $0x68] sm:$0xff]  ;;  %v60_v14 = vld [vmem:[#allocation6 + $0x30] sm:$0xff]  ;;  %v66_v16 = vld [vmem:[#allocation6 + $0x60] sm:$0xff]  ;;  %vm390_vm3 = vcmask 15360   ;;  %s419_s27 = sld [smem:[#allocation2 + $0x2]] }
  0x26   :  { %424 = vmatprep.subr.bf16.mxu0 %v423_v3  ;;  %v427_v13 = vpack.c.bf16 %v67_v11, %v63_v10  ;;  %432 = vmatprep.subr.bf16.mxu1 %v431_v9  ;;  %v433_v17 = vpack.c.bf16 %v60_v14, %v56_v12  ;;  %v429_v18 = vpack.c.bf16 %v66_v16, %v62_v15  ;;  %v65_v19 = vld [vmem:[#allocation6 + $0x58] sm:$0xff]  ;;  %v64_v22 = vld [vmem:[#allocation6 + $0x50] sm:$0xff]  ;;  %v71_v24 = vld [vmem:[#allocation6 + $0x88] sm:$0xf] }
  0x27   :  { %426 = vmatpush1.bf16.msra.mxu0 %v425_v8  ;;  %v69_v20 = vld [vmem:[#allocation6 + $0x78] sm:$0xff]  ;;  %v68_v23 = vld [vmem:[#allocation6 + $0x70] sm:$0xff]  ;;  %v70_v27 = vld [vmem:[#allocation6 + $0x80] sm:$0xf] }
  0x28   :  { %428 = vmatprep.subr.bf16.mxu0 %v427_v13  ;;  %v435_v21 = vpack.c.bf16 %v69_v20, %v65_v19  ;;  %434 = vmatpush1.bf16.msra.mxu1 %v433_v17  ;;  %v437_v25 = vpack.c.bf16 %v68_v23, %v64_v22  ;;  %v73_v26 = vld [vmem:[#allocation6 + $0x98] sm:$0xf]  ;;  %v53_v28 = vld [vmem:[%s659_s2] sm:$0xff]  ;;  %v72_v29 = vld [vmem:[#allocation6 + $0x90] sm:$0xf]  ;;  %s617_s2 = sld [smem:[#allocation2 + $0x3]] }
  0x29   :  { %v386_v14 = vld [vmem:[%s662_s5] sm:$0xff] }
  0x2a   :  { %436 = vmatprep.subr.bf16.mxu1 %v435_v21  ;;  %v387_v23 = vmul.f32 0.997, %v386_v14 }
  0x2b   :  { %430 = vmatpush1.bf16.msra.mxu0 %v429_v18 }
  0x2c   :  { %412 = vmatprep.subr.msk.mxu0 %vm78_vm0, %v71_v24  ;;  %438 = vmatpush1.bf16.msra.mxu1 %v437_v25 }
  0x2d   :  { %415 = vmatprep.subr.msk.mxu1 %vm78_vm0, %v73_v26 }
  0x2f   :  { %413 = vmatpush1.msk.msra.mxu0 %vm78_vm0, %v70_v27 }
  0x30   :  { %414 = vmatmul.mubr.msk.f32.vlgmr.msra.gmra.mrb[0].mxu0 %vm74_vm1, %v53_v28  ;;  %416 = vmatpush1.msk.msra.mxu1 %vm78_vm0, %v72_v29 }
  0x31   :  { %417 = vmatmul.mubr.msk.f32.vlgmr.msra.gmra.mrb[0].mxu1 %vm74_vm1, %v53_v28 }
 0x103   :  { %v579_v30 = vpop.f32.mrb[0].mxu0 }
 0x104   :  { %v581_v31 = vpop.f32.mrb[1].mxu0  ;;  %v239_v32 = vmul.f32 %v579_v30, %v579_v30  ;;  %v587_v34 = vpop.f32.mrb[0].mxu1 }
 0x105   :  { %v240_v33 = vmul.f32 %v581_v31, %v581_v31  ;;  %v233_v35 = vadd.f32 %v581_v31, %v579_v30  ;;  %v591_v36 = vpop.f32.mrb[1].mxu1  ;;  %v244_v37 = vmul.f32 %v587_v34, %v587_v34 }
 0x106   :  { %v245_v38 = vmul.f32 %v591_v36, %v591_v36  ;;  %v236_v40 = vadd.f32 %v591_v36, %v587_v34 }
 0x107   :  { %234 = vadd.xlane.f32.xlu0 %v233_v35  ;;  %v241_v39 = vadd.f32 %v240_v33, %v239_v32  ;;  %v318_v35 = vstv %s617_s2 }
 0x108   :  { %v246_v41 = vadd.f32 %v245_v38, %v244_v37  ;;  %v320_v37 = vstv %s619_s20 }
 0x109   :  { %242 = vadd.xlane.f32.xlu1 %v241_v39 }
 0x10b   :  { %237 = vadd.xlane.f32.xlu0 %v236_v40 }
 0x10d   :  { %247 = vadd.xlane.f32.xlu1 %v246_v41  ;;  %v323_v41 = vstv %s422_s23 }
 0x194   :  { %v235_v43 = vpop.xlane.xlu0 %234 }
 0x195   :  { %v599_v44 = vmul.f32 0.00390625, %v235_v43 }
 0x196   :  { %v243_v45 = vpop.xlane.xlu1 %242 }
 0x197   :  { %v251_v46 = vmul.f32 %v599_v44, %v235_v43  ;;  %v261_v47 = vrot.slane %v599_v44, 4  ;;  %v257_v53 = vmul.f32 %v599_v44, %v599_v44 }
 0x198   :  { %v238_v48 = vpop.xlane.xlu0 %237 }
 0x199   :  { %v252_v49 = vsub.f32 %v243_v45, %v251_v46  ;;  %v262_v50 = vadd.f32 %v261_v47, %v599_v44  ;;  %v604_v51 = vmul.f32 0.00390625, %v238_v48 }
 0x19a   :  { %v248_v56 = vpop.xlane.xlu1 %247 }
 0x19b   :  { %v253_v52 = vmul.f32 0.003921569, %v252_v49  ;;  %v263_v54 = vrot.slane %v262_v50, 2  ;;  %v254_v55 = vmul.f32 %v604_v51, %v238_v48  ;;  %v269_v57 = vrot.slane %v604_v51, 4 }
 0x19c   :  { %v295_v61 = vadd.f32 %v604_v51, %v599_v44  ;;  %v259_v2 = vmul.f32 %v604_v51, %v604_v51 }
 0x19d   :  { %v258_v58 = vadd.f32 %v257_v53, %v253_v52  ;;  %v264_v59 = vadd.f32 %v263_v54, %v262_v50  ;;  %v255_v60 = vsub.f32 %v248_v56, %v254_v55  ;;  %v270_v62 = vadd.f32 %v269_v57, %v604_v51 }
 0x19e   :  { %v615_v6 = vmul.f32 0.5, %v295_v61  ;;  %v319_v42 = vmul.f32 %v318_v35, %v253_v52  ;;  %v310_v52 = vstv %s302_s26 }
 0x19f   :  { %v265_v63 = vrot.slane %v264_v59, 1  ;;  %v276_v0 = vrot.slane %v258_v58, 4  ;;  %v256_v1 = vmul.f32 0.003921569, %v255_v60  ;;  %v271_v3 = vrot.slane %v270_v62, 2 }
 0x1a0   :  { %v300_v17 = vmul.f32 %v615_v6, %v615_v6  ;;  %v311_v61 = vmul.f32 %v310_v52, %v599_v44  ;;  %v309_v44 = vld [vmem:[%s661_s4] sm:$0xff] }
 0x1a1   :  { %v277_v4 = vadd.f32 %v276_v0, %v258_v58  ;;  %v260_v5 = vadd.f32 %v259_v2, %v256_v1  ;;  %v266_v7 = vadd.f32 %v265_v63, %v264_v59  ;;  %v272_v8 = vadd.f32 %v271_v3, %v270_v62  ;;  %v308_v62 = vld [vmem:[%s660_s3] sm:$0xff]  ;;  %s520_s3 = smov [#allocation7]  }
 0x1a2   :  { %v355_v53 = vmul.f32 %v318_v35, %v256_v1  ;;  %v312_v59 = vstv %s418_s25  ;;  %v315_v63 = vstv %s419_s27  ;;  %s398_s4 = sshll.u32 %s520_s3, 4  ;;  %s399_s4 = int_to_ptr.vmem [resolvable:$true] %s398_s4 }
 0x1a3   :  { %v278_v9 = vrot.slane %v277_v4, 2  ;;  %v285_v10 = vrot.slane %v260_v5, 4  ;;  %v298_v11 = vadd.f32 %v260_v5, %v258_v58  ;;  %v273_v12 = vrot.slane %v272_v8, 1  ;;  %s486_s8 = scalar_lea.vmem %s399_s4, 512  ;;  %p491_p0 = scmp.lt.s32.totalorder %s399_s4, %s399_s4 }
 0x1a4   :  { %v268_v18 = vmul.f32 0.125, %v266_v7  ;;  %p487_p13 = scmp.ne.s32.totalorder %s399_s4, %s486_s8  ;;  %p492_p1 = scmp.lt.s32.totalorder %s486_s8, %s486_s8 }
 0x1a5   :  { %v279_v13 = vadd.f32 %v278_v9, %v277_v4  ;;  %v286_v15 = vadd.f32 %v285_v10, %v260_v5  ;;  %v299_v16 = vmul.f32 0.5, %v298_v11  ;;  %v274_v20 = vadd.f32 %v273_v12, %v272_v8 }
 0x1a6   :  { %v283_v29 = vmul.f32 %v268_v18, %v268_v18  ;;  %v313_v60 = vmul.f32 %v312_v59, %v268_v18  ;;  %v316_v4 = vmul.f32 %v315_v63, %v615_v6  ;;  %v351_v5 = vmul.f32 %v310_v52, %v604_v51  ;;  %p493_p2 = por %p492_p1, %p491_p0 }
 0x1a7   :  { %v280_v19 = vrot.slane %v279_v13, 1  ;;  %v287_v21 = vrot.slane %v286_v15, 2  ;;  %v301_v22 = vsub.f32 %v299_v16, %v300_v17  ;;  %v275_v32 = vmul.f32 0.125, %v274_v20 }
 0x1a8   :  { %v314_v0 = vadd.f32 %v313_v60, %v311_v61  ;;  %p494_p3 = pnand %p493_p2, %p487_p13 }
 0x1a9   :  { %v281_v24 = vadd.f32 %v280_v19, %v279_v13  ;;  %v288_v25 = vadd.f32 %v287_v21, %v286_v15  ;;  %v385_v26 = vsel %vm384_vm2, %v615_v6, %v301_v22  ;;  %v292_v46 = vmul.f32 %v275_v32, %v275_v32 }
 0x1aa   :  { %v388_v27 = vmul.f32 0.003, %v385_v26  ;;  %v324_v49 = vmul.f32 %v323_v41, %v301_v22  ;;  %v352_v1 = vmul.f32 %v312_v59, %v275_v32  ;;  %v317_v7 = vadd.f32 %v316_v4, %v314_v0 }
 0x1ab   :  { %v282_v28 = vmul.f32 0.125, %v281_v24  ;;  %v289_v33 = vrot.slane %v288_v25, 1 }
 0x1ac   :  { %v389_v38 = vadd.f32 %v388_v27, %v387_v23  ;;  %v353_v8 = vadd.f32 %v352_v1, %v351_v5 }
 0x1ad   :  { %v284_v39 = vsub.f32 %v282_v28, %v283_v29  ;;  %v290_v40 = vadd.f32 %v289_v33, %v288_v25 }
 0x1ae   :  { %391 = vst.msk [vmem:[%s664_s7] sm:$0xff] %vm390_vm3, %v389_v38  ;;  %v354_v12 = vadd.f32 %v353_v8, %v316_v4 }
 0x1af   :  { %v321_v43 = vmul.f32 %v320_v37, %v284_v39  ;;  %v291_v45 = vmul.f32 0.125, %v290_v40 }
 0x1b1   :  { %v322_v47 = vadd.f32 %v321_v43, %v319_v42  ;;  %v293_v48 = vsub.f32 %v291_v45, %v292_v46 }
 0x1b3   :  { %v325_v50 = vadd.f32 %v324_v49, %v322_v47  ;;  %v356_v54 = vmul.f32 %v320_v37, %v293_v48 }
 0x1b5   :  { %v326_v55 = vadd.f32 1e-05, %v325_v50  ;;  %v357_v56 = vadd.f32 %v356_v54, %v355_v53 }
 0x1b7   :  { %448 = vrsqrt.f32 %v326_v55  ;;  %v358_v57 = vadd.f32 %v357_v56, %v324_v49 }
 0x1b9   :  { %v359_v58 = vadd.f32 1e-05, %v358_v57 }
 0x1bb   :  { %450 = vrsqrt.f32 %v359_v58 }
 0x1c1   :  { %v449_v2 = vpop.eup %448 }
 0x1c2   :  { %v328_v3 = vmul.f32 %v449_v2, %v308_v62 }
 0x1c4   :  { %333 = vperm.xlu0 %446, %v328_v3   ;;  %v329_v11 = vmul.f32 %v328_v3, %v317_v7 }
 0x1c5   :  { %v451_v9 = vpop.eup %450 }
 0x1c6   :  { %v361_v10 = vmul.f32 %v451_v9, %v308_v62  ;;  %v330_v13 = vsub.f32 %v309_v44, %v329_v11 }
 0x1c8   :  { %366 = vperm.xlu1 %447, %v361_v10   ;;  %v362_v14 = vmul.f32 %v361_v10, %v354_v12 }
 0x1ca   :  { %v363_v15 = vsub.f32 %v309_v44, %v362_v14 }
 0x1cc   :  { %340 = vperm.xlu1 %447, %v330_v13  }
 0x1d0   :  { %373 = vperm.xlu1 %447, %v363_v15  }
 0x243   :  { %v334_v6 = vpop.permute.xlu0 %333 }
 0x244   :  { %v336_v51 = vmul.f32 %v334_v6, %v579_v30  ;;  %v337_v17 = vmul.f32 %v334_v6, %v581_v31 }
 0x247   :  { %v367_v16 = vpop.permute.xlu1 %366 }
 0x248   :  { %v369_v21 = vmul.f32 %v367_v16, %v587_v34  ;;  %v370_v22 = vmul.f32 %v367_v16, %v591_v36 }
 0x24b   :  { %v341_v18 = vpop.permute.xlu1 %340 }
 0x24c   :  { %v343_v19 = vadd.f32 %v341_v18, %v336_v51  ;;  %v344_v20 = vadd.f32 %v341_v18, %v337_v17 }
 0x24e   :  { %v345_v23 = vmul.f32 0.01, %v343_v19  ;;  %v346_v24 = vmul.f32 0.01, %v344_v20 }
 0x24f   :  { %v374_v25 = vpop.permute.xlu1 %373 }
 0x250   :  { %v347_v26 = vmax.f32 %v343_v19, %v345_v23  ;;  %v348_v27 = vmax.f32 %v344_v20, %v346_v24  ;;  %v376_v28 = vadd.f32 %v374_v25, %v369_v21  ;;  %v377_v29 = vadd.f32 %v374_v25, %v370_v22 }
 0x252   :  { %349 = vst [vmem:[#allocation7] sm:$0xff] %v347_v26  ;;  %350 = vst [vmem:[#allocation7 + $0x8] sm:$0xff] %v348_v27  ;;  %v378_v30 = vmul.f32 0.01, %v376_v28  ;;  %v379_v31 = vmul.f32 0.01, %v377_v29 }
 0x254   :  { %v380_v32 = vmax.f32 %v376_v28, %v378_v30  ;;  %v381_v33 = vmax.f32 %v377_v29, %v379_v31 }
 0x256   :  { %382 = vst [vmem:[#allocation7 + $0x10] sm:$0xff] %v380_v32  ;;  %383 = vst [vmem:[#allocation7 + $0x18] sm:$0xff] %v381_v33 }
 0x257   :  { %497 = shalt.err (!%p494_p3)
}
 0x258   :  { %s498_s11 = scalar_lea.hbm %s663_s6, 512 }
 0x259   :  { %p499_p4 = scmp.ne.s32.totalorder %s663_s6, %s498_s11  ;;  %p502_p5 = scmp.lt.u32.totalorder %s498_s11, %s663_s6 }
 0x25b   :  { %p504_p6 = pnand %p502_p5, %p499_p4 }
 0x25d   :  { %507 = shalt.err (!%p504_p6)
}
 0x25e   :  { %401 = dma.vmem_to_hbm [thread:$0]  %s399_s4, 512, %s663_s6, [#allocation4]  }
 0x25f   :  { %512 = dma.done.wait [#allocation4], 512  }
 0x260   :  { %513 = vsyncadd [#allocation4], 4294966784 }
 0x261   :  { %409 = vsyncpa [#allocation3], 1 }
 0x262   :  { %410 = vsyncpa [#allocation4], 1 }
 0x263   :  { %411 = vsyncpa [#allocation5], 1 }

</bundles_post_ra>
